<compile_context>
chip_gen: v6e
topology: v6e:2x2x1
jax: 0.10.0
libtpu: 0.0.40
codegen_flags: <defaults>
</compile_context>

<pallas_src>
from functools import partial

import jax
import jax.numpy as jnp
from jax import lax
from jax.experimental import pallas as pl
from jax.experimental.pallas import tpu as pltpu

# Safe on every generation: v7x physical VMEM is 64 MiB (leave headroom), v5e/v6e have 128 MiB.
_VMEM_LIMIT = 48 * 1024 * 1024


def _round_up(x, m):
    return ((x + m - 1) // m) * m


def _pick_tile(n, preferred):
    """Largest multiple-of-128 tile <= min(preferred, n) that divides n (n is a 128-multiple)."""
    t = min(preferred, n)
    t = (t // 128) * 128
    t = max(t, 128)
    while t > 128 and n % t != 0:
        t -= 128
    return t


def _choose_prop_tiles(n_pad, d_pad, budget_bytes=24 * 1024 * 1024):
    """Pick (tm, tk, h_resident) for the propagation matmul against a VMEM budget."""
    # Keep h VMEM-resident when its (conservatively double-counted) footprint is small.
    h_resident = (2 * n_pad * d_pad * 2) <= 8 * 1024 * 1024
    tk = _pick_tile(n_pad, 2048)
    tm_pref = 1024 if n_pad >= 8192 else 512
    if n_pad >= 256:
        tm_pref = min(tm_pref, n_pad // 2)  # keep >=2 steps on the parallel axis (v7x megacore)
    tm = _pick_tile(n_pad, tm_pref)

    def footprint(tm_, tk_):
        adj = 2 * tm_ * tk_ * 2                                     # bf16 adj tile, double-buffered
        h = (2 * n_pad * d_pad * 2) if h_resident else (2 * tk_ * d_pad * 2)
        out = 2 * tm_ * d_pad * (4 + 2)                             # f32 + bf16 output blocks
        return adj + h + out

    while footprint(tm, tk) > budget_bytes and tk > 128:
        tk = _pick_tile(n_pad, tk - 128)
    while footprint(tm, tk) > budget_bytes and tm > 128:
        tm = _pick_tile(n_pad, tm - 128)
    return tm, tk, h_resident


def _choose_score_tile(n_pad):
    tn = _pick_tile(n_pad, 4096)
    if n_pad >= 256 and n_pad // tn < 2:
        tn = _pick_tile(n_pad, n_pad // 2)  # keep >=2 steps for megacore sharding
    return tn


# --------------------- kernel 1: one propagation layer (adj @ h) ---------------------
def _adj_matmul_kernel(adj_ref, h_ref, out_ref, out_bf16_ref, *, tk, h_resident):
    k = pl.program_id(1)

    @pl.when(k == 0)
    def _():
        out_ref[...] = jnp.zeros_like(out_ref)

    if h_resident:
        ks = pl.multiple_of(k * tk, 128)
        h_blk = h_ref[pl.ds(ks, tk), :]          # h DMA'd once (constant block index)
    else:
        h_blk = h_ref[...]                       # streamed (tk, D) block

    # Accumulate directly in the resident f32 output block (no VMEM scratch).
    out_ref[...] += jnp.dot(adj_ref[...], h_blk, preferred_element_type=jnp.float32)

    @pl.when(k == pl.num_programs(1) - 1)
    def _():
        out_bf16_ref[...] = out_ref[...].astype(jnp.bfloat16)


def adj_matmul(adj_bf16, h_bf16, *, tm, tk, h_resident):
    """Tiled, pipelined (N,N) @ (N,D): bf16 streaming inputs, f32 accumulation.

    Returns (h_new_f32, h_new_bf16)."""
    n = adj_bf16.shape[0]
    d = h_bf16.shape[1]
    if h_resident:
        h_spec = pl.BlockSpec((n, d), lambda i, k: (0, 0))
    else:
        h_spec = pl.BlockSpec((tk, d), lambda i, k: (k, 0))

    flops = 2 * n * n * d
    bytes_accessed = n * n * 2 + n * d * 2 + n * d * (4 + 2)

    return pl.pallas_call(
        partial(_adj_matmul_kernel, tk=tk, h_resident=h_resident),
        out_shape=(jax.ShapeDtypeStruct((n, d), jnp.float32),
                   jax.ShapeDtypeStruct((n, d), jnp.bfloat16)),
        grid_spec=pltpu.PrefetchScalarGridSpec(
            num_scalar_prefetch=0,
            grid=(n // tm, n // tk),
            in_specs=[
                pl.BlockSpec((tm, tk), lambda i, k: (i, k)),
                h_spec,
            ],
            out_specs=(pl.BlockSpec((tm, d), lambda i, k: (i, 0)),
                       pl.BlockSpec((tm, d), lambda i, k: (i, 0))),
        ),
        compiler_params=pltpu.CompilerParams(
            dimension_semantics=("parallel", "arbitrary"),
            vmem_limit_bytes=_VMEM_LIMIT,
        ),
        cost_estimate=pl.CostEstimate(flops=int(flops), transcendentals=0,
                                      bytes_accessed=int(bytes_accessed)),
    )(adj_bf16, h_bf16)


def graph_conv(enhanced_adj, emb, layers, *, tm, tk, h_resident):
    """LightGCN-style propagation averaged over (layers+1) representations."""
    adj_bf16 = enhanced_adj.astype(jnp.bfloat16)   # halve HBM bytes on the dominant stream
    acc = emb.astype(jnp.float32)
    h_bf16 = emb.astype(jnp.bfloat16)
    for _ in range(layers):
        h_f32, h_bf16 = adj_matmul(adj_bf16, h_bf16, tm=tm, tk=tk, h_resident=h_resident)
        acc = acc + h_f32
    return acc / float(layers + 1)                 # (N_pad, D_pad) f32


# ---------------- session embedding (masked mean + L2 normalize + w_k), tiny: stays in JAX ----------------
def compute_select(inputs, seq_hidden, w_k):
    mask = (inputs != 0).astype(jnp.float32)[..., None]           # (B, L, 1)
    cnt = jnp.maximum(jnp.sum(mask, axis=1), 1.0)                 # (B, 1) clamp: avoid 0/0
    sess = jnp.sum(seq_hidden.astype(jnp.float32) * mask, axis=1) / cnt   # (B, D)
    ssq = jnp.sum(sess * sess, axis=-1, keepdims=True)
    return (w_k * sess) * lax.rsqrt(jnp.maximum(ssq, 1e-24))      # (B, D)


# ---------------- kernel 2: normalize item tile + score (tiled over N) ----------------
def _score_kernel(select_ref, items_ref, out_ref):
    # F.normalize(graph_item_embs, dim=-1) on the current bf16 tile, in f32.
    items = items_ref[...].astype(jnp.float32)                    # (tN, D)
    isq = jnp.sum(items * items, axis=-1, keepdims=True)
    items_n = items * lax.rsqrt(jnp.maximum(isq, 1e-24))

    # scores tile = select @ items_n^T, expressed as a contraction of the last
    # dims so the MXU consumes the RHS without a transposed VMEM copy.
    out_ref[...] = lax.dot_general(
        select_ref[...], items_n,
        dimension_numbers=(((1,), (1,)), ((), ())),
        preferred_element_type=jnp.float32).astype(out_ref.dtype)


def session_scores(select, items_bf16, *, tn):
    b, d = select.shape
    n = items_bf16.shape[0]
    flops = 2 * b * n * d + 3 * n * d
    bytes_accessed = n * d * 2 + b * d * 4 + b * n * 4
    return pl.pallas_call(
        _score_kernel,
        out_shape=jax.ShapeDtypeStruct((b, n), jnp.float32),
        grid_spec=pltpu.PrefetchScalarGridSpec(
            num_scalar_prefetch=0,
            grid=(n // tn,),
            in_specs=[
                pl.BlockSpec((b, d), lambda j: (0, 0)),            # revisited -> DMA'd once
                pl.BlockSpec((tn, d), lambda j: (j, 0)),           # bf16 item-table stream
            ],
            out_specs=pl.BlockSpec((b, tn), lambda j: (0, j)),     # lane-dense output tile
        ),
        compiler_params=pltpu.CompilerParams(
            dimension_semantics=("parallel",),
            vmem_limit_bytes=_VMEM_LIMIT,
        ),
        cost_estimate=pl.CostEstimate(flops=int(flops), transcendentals=int(n),
                                      bytes_accessed=int(bytes_accessed)),
    )(select, items_bf16)


# ------------------------------- full forward pass -------------------------------
def forward(item_emb_weight, enhanced_adj, items, inputs, alias_inputs, *, layers, w_k):
    n, d = item_emb_weight.shape
    n_pad = _round_up(n, 128)
    d_pad = _round_up(d, 128)        # lane-dense feature dim for MXU inputs / vector stores

    emb = jnp.pad(item_emb_weight.astype(jnp.float32),
                  ((0, n_pad - n), (0, d_pad - d)))
    adj = jnp.pad(enhanced_adj.astype(jnp.float32),
                  ((0, n_pad - n), (0, n_pad - n)))

    # graph_item_embs = self.item_conv(self.item_embedding.weight, self.adj)
    tm, tk, h_resident = _choose_prop_tiles(n_pad, d_pad)
    graph_item_embs = graph_conv(adj, emb, layers, tm=tm, tk=tk, h_resident=h_resident)

    # hidden = graph_item_embs[items]; seq_hidden = gather(hidden, 1, alias_inputs)
    #   == graph_item_embs[items[b, alias_inputs[b, t]]]  -> single fused gather,
    # which removes the (B, U, D) HBM intermediate.
    seq_ids = jnp.take_along_axis(items, alias_inputs, axis=1)     # (B, L)
    seq_hidden = graph_item_embs[seq_ids]                          # (B, L, d_pad)
    # TODO(synk): F.dropout(hidden, p, training=False) is a no-op in eval mode.

    # select = w_k * F.normalize(mean_pool(seq_hidden, mask), dim=-1)  -- tiny, JAX prologue
    select = compute_select(inputs, seq_hidden, w_k)               # (B, d_pad) f32

    # scoring: stream the item table bf16, normalize + matmul per tile
    items_bf16 = graph_item_embs.astype(jnp.bfloat16)
    tn = _choose_score_tile(n_pad)
    scores_pad = session_scores(select, items_bf16, tn=tn)
    return scores_pad[:, :n]                                       # (B, N)


# ------------------------------------ driver --------------------------------------
if __name__ == "__main__":
    # Small, deterministic configuration (mirrors opt / constructor args).
    num_node = 127          # -> N = num_node + 1 = 128 (row 0 is padding)
    dim = 32                # opt.dim (padded to 128 internally)
    layers = 2              # opt.layers
    len_session = 8         # L
    batch = 8               # B
    w_k = 12.0              # opt.w_k
    N = num_node + 1

    key = jax.random.PRNGKey(0)
    k_emb, k_adj, k_inp, k_perm = jax.random.split(key, 4)

    # nn.Embedding(num_node + 1, dim, padding_idx=0): deterministic init, padding row zeroed.
    item_emb_weight = 0.1 * jax.random.normal(k_emb, (N, dim), dtype=jnp.float32)
    item_emb_weight = item_emb_weight.at[0].set(0.0)

    # Raw adjacency (symmetric, with self loops) then _enhance_adj: row-normalize by degree.
    adj_raw = (jax.random.uniform(k_adj, (N, N)) < 0.05).astype(jnp.float32)
    adj_raw = jnp.minimum(jnp.maximum(adj_raw, adj_raw.T) + jnp.eye(N, dtype=jnp.float32), 1.0)
    degrees = jnp.sum(adj_raw, axis=1, keepdims=True)
    enhanced_adj = adj_raw / degrees                                  # (N, N)

    # Session batch: inputs (B, L) item ids with zero padding (>=1 real item per row).
    raw_inputs = jax.random.randint(k_inp, (batch, len_session), 1, num_node + 1,
                                    dtype=jnp.int32)
    lengths = 1 + (jnp.arange(batch, dtype=jnp.int32) % len_session)  # 1..L
    pos = jnp.arange(len_session, dtype=jnp.int32)[None, :]
    inputs = jnp.where(pos < lengths[:, None], raw_inputs, 0)

    # items[b] is a permutation of inputs[b]; alias_inputs is the inverse permutation
    # so that items[b, alias_inputs[b, t]] == inputs[b, t] (matches the torch gather).
    perms = jnp.stack([jax.random.permutation(jax.random.fold_in(k_perm, b), len_session)
                       for b in range(batch)]).astype(jnp.int32)
    alias_inputs = jnp.argsort(perms, axis=1).astype(jnp.int32)
    items = jnp.take_along_axis(inputs, perms, axis=1)

    scores = forward(item_emb_weight, enhanced_adj, items, inputs, alias_inputs,
                     layers=layers, w_k=w_k)
    scores = jax.block_until_ready(scores)

    assert scores.shape == (batch, N) and scores.dtype == jnp.float32
    assert bool(jnp.all(jnp.isfinite(scores)))
    print("KERNEL_OK")
</pallas_src>

<mosaic_0001>
module attributes {stable_mosaic.version = 11 : i64} {
  func.func @_adj_matmul_kernel(%arg0: i32, %arg1: i32, %arg2: memref<128x128xbf16, #tpu.memory_space<vmem>>, %arg3: memref<128x128xbf16, #tpu.memory_space<vmem>>, %arg4: memref<128x128xf32, #tpu.memory_space<vmem>>, %arg5: memref<128x128xbf16, #tpu.memory_space<vmem>>) attributes {dimension_semantics = [#tpu.dimension_semantics<parallel>, #tpu.dimension_semantics<arbitrary>], iteration_bounds = array<i64: 1, 1>, scalar_prefetch = 0 : i64, scratch_operands = 0 : i64, tpu.core_type = #tpu.core_type<tc>, window_params = [{transform_indices = @transform_0, window_bounds = array<i64: 128, 128>}, {pipeline_mode = #tpu.pipeline_mode<synchronous>, transform_indices = @transform_1, window_bounds = array<i64: 128, 128>}, {transform_indices = @transform_2, window_bounds = array<i64: 128, 128>}, {transform_indices = @transform_3, window_bounds = array<i64: 128, 128>}]} {
    %c0_i32 = arith.constant 0 : i32
    %0 = arith.cmpi eq, %arg1, %c0_i32 : i32
    %1 = arith.extui %0 : i1 to i32
    %c0_i32_0 = arith.constant 0 : i32
    %2 = arith.cmpi ne, %1, %c0_i32_0 : i32
    scf.if %2 {
      %cst_9 = arith.constant 0.000000e+00 : f32
      %15 = vector.broadcast %cst_9 : f32 to vector<128x128xf32>
      %c0_10 = arith.constant 0 : index
      %c0_11 = arith.constant 0 : index
      %16 = vector.load %arg4[%c0_10, %c0_11] : memref<128x128xf32, #tpu.memory_space<vmem>>, vector<128x128xf32>
      tpu.vector_store %arg4[%c0_10, %c0_11], %15 {strides = array<i32>} : memref<128x128xf32, #tpu.memory_space<vmem>>, vector<128x128xf32>,
    } else {
    }
    %c128_i32 = arith.constant 128 : i32
    %3 = arith.muli %arg1, %c128_i32 : i32
    %4 = tpu.assume_multiple %3, 128 : i32
    %5 = arith.index_cast %4 : i32 to index
    %c0 = arith.constant 0 : index
    %6 = vector.load %arg3[%5, %c0] : memref<128x128xbf16, #tpu.memory_space<vmem>>, vector<128x128xbf16>
    %c0_1 = arith.constant 0 : index
    %c0_2 = arith.constant 0 : index
    %7 = vector.load %arg4[%c0_1, %c0_2] : memref<128x128xf32, #tpu.memory_space<vmem>>, vector<128x128xf32>
    %c0_3 = arith.constant 0 : index
    %c0_4 = arith.constant 0 : index
    %8 = vector.load %arg2[%c0_3, %c0_4] : memref<128x128xbf16, #tpu.memory_space<vmem>>, vector<128x128xbf16>
    %cst = arith.constant dense<0.000000e+00> : vector<128x128xf32>
    %9 = tpu.matmul %8, %6, %cst {dimension_numbers = #tpu.dot_dimension_numbers<[1], [0], [0], [1], [0, 0, 1, 1], [], []>} : vector<128x128xbf16>, vector<128x128xbf16>, vector<128x128xf32> -> vector<128x128xf32>
    %10 = arith.addf %7, %9 : vector<128x128xf32>
    %c0_5 = arith.constant 0 : index
    %c0_6 = arith.constant 0 : index
    %11 = vector.load %arg4[%c0_5, %c0_6] : memref<128x128xf32, #tpu.memory_space<vmem>>, vector<128x128xf32>
    tpu.vector_store %arg4[%c0_5, %c0_6], %10 {strides = array<i32>} : memref<128x128xf32, #tpu.memory_space<vmem>>, vector<128x128xf32>,
    %c0_i32_7 = arith.constant 0 : i32
    %12 = arith.cmpi eq, %arg1, %c0_i32_7 : i32
    %13 = arith.extui %12 : i1 to i32
    %c0_i32_8 = arith.constant 0 : i32
    %14 = arith.cmpi ne, %13, %c0_i32_8 : i32
    scf.if %14 {
      %c0_9 = arith.constant 0 : index
      %c0_10 = arith.constant 0 : index
      %15 = vector.load %arg4[%c0_9, %c0_10] : memref<128x128xf32, #tpu.memory_space<vmem>>, vector<128x128xf32>
      %16 = arith.truncf %15 : vector<128x128xf32> to vector<128x128xbf16>
      %c0_11 = arith.constant 0 : index
      %c0_12 = arith.constant 0 : index
      %17 = vector.load %arg5[%c0_11, %c0_12] : memref<128x128xbf16, #tpu.memory_space<vmem>>, vector<128x128xbf16>
      tpu.vector_store %arg5[%c0_11, %c0_12], %16 {strides = array<i32>} : memref<128x128xbf16, #tpu.memory_space<vmem>>, vector<128x128xbf16>,
    } else {
    }
    return
  }
  func.func @transform_0(%arg0: i32, %arg1: i32) -> (i32, i32) {
    %c0_i32 = arith.constant 0 : i32
    return %arg0, %arg1 : i32, i32
  }
  func.func @transform_1(%arg0: i32, %arg1: i32) -> (i32, i32) {
    %c0_i32 = arith.constant 0 : i32
    %c0_i32_0 = arith.constant 0 : i32
    %c0_i32_1 = arith.constant 0 : i32
    return %c0_i32, %c0_i32_0 : i32, i32
  }
  func.func @transform_2(%arg0: i32, %arg1: i32) -> (i32, i32) {
    %c0_i32 = arith.constant 0 : i32
    %c0_i32_0 = arith.constant 0 : i32
    return %arg0, %c0_i32 : i32, i32
  }
  func.func @transform_3(%arg0: i32, %arg1: i32) -> (i32, i32) {
    %c0_i32 = arith.constant 0 : i32
    %c0_i32_0 = arith.constant 0 : i32
    return %arg0, %c0_i32 : i32, i32
  }
}

</mosaic_0001>

<bundles_post_ra>
// kernel: tpu_custom_call.1
= control target key start
LH: loop header
LB: loop body
LE: loop exit
PB: predicated region body
PF: predicated region fallthrough
CT: control target
= control target key end

     0   :  { %9 = vsyncpa [#allocation3], 0  ;;  %s798_s0 = inlined_call_operand.hbm [shape: bf16[128,128], index: 0, kind: input, shape index: {}]   ;;  %s799_s1 = inlined_call_operand.hbm [shape: bf16[128,128], index: 1, kind: input, shape index: {}]   ;;  %s800_s2 = inlined_call_operand.hbm [shape: f32[128,128], index: 2, kind: output, shape index: {0}]   ;;  %s801_s3 = inlined_call_operand.hbm [shape: bf16[128,128], index: 3, kind: output, shape index: {1}]  }
   0x1   :  { %10 = vsyncpa [#allocation6], 0 }
   0x2   :  { %11 = vsyncpa [#allocation4], 0 }
   0x3   :  { %12 = vsyncpa [#allocation9], 0  ;;  %s749_s12 = smov [#allocation2]  }
   0x4   :  { %s18_s13 = sshll.u32 %s749_s12, 4  ;;  %s19_s13 = int_to_ptr.vmem [resolvable:$true] %s18_s13 }
   0x5   :  { %s669_s14 = scalar_lea.vmem %s19_s13, 1024  ;;  %p674_p1 = scmp.lt.s32.totalorder %s19_s13, %s19_s13 }
   0x6   :  { %p670_p0 = scmp.ne.s32.totalorder %s19_s13, %s669_s14  ;;  %p675_p2 = scmp.lt.s32.totalorder %s669_s14, %s669_s14 }
   0x8   :  { %p676_p3 = por %p675_p2, %p674_p1 }
   0xa   :  { %p677_p4 = pnand %p676_p3, %p670_p0 }
   0xc   :  { %680 = shalt.err (!%p677_p4)
}
   0xd   :  { %s750_s15 = smov 64   ;;  %s751_s16 = smov 4  }
   0xe   :  { %24 = dma.hbm_to_vmem [thread:$0]  %s798_s0, 1024, %s19_s13, [#allocation3], %s750_s15, %s750_s15, %s751_s16  }
   0xf   :  { %s752_s19 = smov [#allocation5]  }
  0x10   :  { %s30_s20 = sshll.u32 %s752_s19, 4  ;;  %s31_s20 = int_to_ptr.vmem [resolvable:$true] %s30_s20 }
  0x11   :  { %s689_s21 = scalar_lea.vmem %s31_s20, 1024  ;;  %p694_p6 = scmp.lt.s32.totalorder %s31_s20, %s31_s20 }
  0x12   :  { %p690_p5 = scmp.ne.s32.totalorder %s31_s20, %s689_s21  ;;  %p695_p7 = scmp.lt.s32.totalorder %s689_s21, %s689_s21 }
  0x14   :  { %p696_p8 = por %p695_p7, %p694_p6 }
  0x16   :  { %p697_p9 = pnand %p696_p8, %p690_p5 }
  0x18   :  { %700 = shalt.err (!%p697_p9)
}
  0x19   :  { %36 = dma.hbm_to_vmem [thread:$0]  %s799_s1, 1024, %s31_s20, [#allocation6], %s750_s15, %s750_s15, %s751_s16  }
  0x1a   :  { %741 = dma.done.wait [#allocation3], 1024  }
  0x1b   :  { %742 = vsyncadd [#allocation3], 4294966272 }
  0x1c   :  { %743 = dma.done.wait [#allocation6], 1024  }
  0x1d   :  { %744 = vsyncadd [#allocation6], 4294966272  ;;  %v645_v0 = vld [vmem:[#allocation5 + $0x38] sm:$0xff]   ;;  %v646_v1 = vld [vmem:[#allocation5 + $0x30] sm:$0xff]   ;;  %s753_s0 = smov [#allocation7]  }
  0x1e   :  { %588 = vmatprep.subr.bf16.mxu0 %v645_v0  ;;  %620 = vmatprep.subr.bf16.mxu1 %v645_v0  ;;  %v647_v2 = vld [vmem:[#allocation5 + $0x28] sm:$0xff]   ;;  %v648_v3 = vld [vmem:[#allocation5 + $0x20] sm:$0xff]   ;;  %v649_v6 = vld [vmem:[#allocation5 + $0x18] sm:$0xff]   ;;  %s446_s1 = sshll.u32 %s753_s0, 4  ;;  %s447_s1 = int_to_ptr.vmem [resolvable:$true] %s446_s1 }
  0x1f   :  { %589 = vmatpush3.bf16.msra.mxu0 %v645_v0  ;;  %628 = vmatpush3.bf16.msra.mxu1 %v645_v0  ;;  %v653_v4 = vld [vmem:[#allocation2] sm:$0xff]   ;;  %v650_v7 = vld [vmem:[#allocation5 + $0x10] sm:$0xff]   ;;  %v651_v8 = vld [vmem:[#allocation5 + $0x8] sm:$0xff]   ;;  %s701_s24 = scalar_lea.vmem %s447_s1, 2048  ;;  %p706_p11 = scmp.lt.s32.totalorder %s447_s1, %s447_s1 }
  0x20   :  { %590 = vmatprep.subr.bf16.mxu0 %v646_v1  ;;  %621 = vmatprep.subr.bf16.mxu1 %v646_v1  ;;  %v654_v5 = vld [vmem:[#allocation2 + $0x20] sm:$0xff]   ;;  %v655_v10 = vld [vmem:[#allocation2 + $0x8] sm:$0xff]   ;;  %v657_v12 = vld [vmem:[#allocation2 + $0x10] sm:$0xff]   ;;  %p702_p10 = scmp.ne.s32.totalorder %s447_s1, %s701_s24  ;;  %p707_p12 = scmp.lt.s32.totalorder %s701_s24, %s701_s24 }
  0x21   :  { %604 = vmatprep.mubr.bf16.mxu0 %v653_v4  ;;  %612 = vmatprep.mubr.bf16.mxu1 %v654_v5  ;;  %v652_v9 = vld [vmem:[#allocation5] sm:$0xff]   ;;  %v656_v11 = vld [vmem:[#allocation2 + $0x28] sm:$0xff]   ;;  %v658_v13 = vld [vmem:[#allocation2 + $0x30] sm:$0xff]  }
  0x22   :  { %v659_v14 = vld [vmem:[#allocation2 + $0x18] sm:$0xff]   ;;  %p708_p13 = por %p707_p12, %p706_p11 }
  0x23   :  { %591 = vmatpush3.bf16.msra.mxu0 %v646_v1  ;;  %629 = vmatpush3.bf16.msra.mxu1 %v646_v1  ;;  %v660_v15 = vld [vmem:[#allocation2 + $0x38] sm:$0xff]  }
  0x24   :  { %592 = vmatprep.subr.bf16.mxu0 %v647_v2  ;;  %622 = vmatprep.subr.bf16.mxu1 %v647_v2  ;;  %p709_p0 = pnand %p708_p13, %p702_p10 }
  0x27   :  { %593 = vmatpush3.bf16.msra.mxu0 %v647_v2  ;;  %630 = vmatpush3.bf16.msra.mxu1 %v647_v2 }
  0x28   :  { %594 = vmatprep.subr.bf16.mxu0 %v648_v3  ;;  %623 = vmatprep.subr.bf16.mxu1 %v648_v3 }
  0x2b   :  { %595 = vmatpush3.bf16.msra.mxu0 %v648_v3  ;;  %631 = vmatpush3.bf16.msra.mxu1 %v648_v3 }
  0x2c   :  { %596 = vmatprep.subr.bf16.mxu0 %v649_v6  ;;  %624 = vmatprep.subr.bf16.mxu1 %v649_v6 }
  0x2f   :  { %597 = vmatpush3.bf16.msra.mxu0 %v649_v6  ;;  %632 = vmatpush3.bf16.msra.mxu1 %v649_v6 }
  0x30   :  { %598 = vmatprep.subr.bf16.mxu0 %v650_v7  ;;  %625 = vmatprep.subr.bf16.mxu1 %v650_v7 }
  0x33   :  { %599 = vmatpush3.bf16.msra.mxu0 %v650_v7  ;;  %633 = vmatpush3.bf16.msra.mxu1 %v650_v7 }
  0x34   :  { %600 = vmatprep.subr.bf16.mxu0 %v651_v8  ;;  %626 = vmatprep.subr.bf16.mxu1 %v651_v8 }
  0x37   :  { %601 = vmatpush3.bf16.msra.mxu0 %v651_v8  ;;  %634 = vmatpush3.bf16.msra.mxu1 %v651_v8 }
  0x38   :  { %602 = vmatprep.subr.bf16.mxu0 %v652_v9  ;;  %627 = vmatprep.subr.bf16.mxu1 %v652_v9 }
  0x3b   :  { %603 = vmatpush3.bf16.msra.mxu0 %v652_v9  ;;  %635 = vmatpush3.bf16.msra.mxu1 %v652_v9 }
  0x3e   :  { %605 = vmatmul.mubr.bf16.vlgmr.msra.gmra.mxu0 %v655_v10  ;;  %613 = vmatmul.mubr.bf16.vlgmr.msra.gmra.mxu1 %v656_v11 }
  0x3f   :  { %608 = vmatprep.mubr.bf16.mxu0 %v657_v12  ;;  %616 = vmatprep.mubr.bf16.mxu1 %v658_v13 }
  0x46   :  { %609 = vmatmul.mubr.bf16.gmra.mxu0 %v659_v14  ;;  %617 = vmatmul.mubr.bf16.gmra.mxu1 %v660_v15 }
  0xfe   :  { %v606_v16 = vpop.f32.mrf.mxu0  ;;  %v614_v17 = vpop.f32.mrf.mxu1 }
  0xff   :  { %328 = vst [vmem:[#allocation7 + $0x10] sm:$0xff] %v606_v16  ;;  %336 = vst [vmem:[#allocation7 + $0x50] sm:$0xff] %v614_v17 }
 0x100   :  { %v247_v18 = vpop.f32.mrf.mxu0  ;;  %v279_v19 = vpop.f32.mrf.mxu1 }
 0x101   :  { %326 = vst [vmem:[#allocation7] sm:$0xff] %v247_v18  ;;  %334 = vst [vmem:[#allocation7 + $0x40] sm:$0xff] %v279_v19 }
 0x102   :  { %v607_v20 = vpop.f32.mrf.mxu0  ;;  %v615_v21 = vpop.f32.mrf.mxu1 }
 0x103   :  { %329 = vst [vmem:[#allocation7 + $0x18] sm:$0xff] %v607_v20  ;;  %337 = vst [vmem:[#allocation7 + $0x58] sm:$0xff] %v615_v21 }
 0x104   :  { %v250_v22 = vpop.f32.mrf.mxu0  ;;  %v282_v23 = vpop.f32.mrf.mxu1 }
 0x105   :  { %327 = vst [vmem:[#allocation7 + $0x8] sm:$0xff] %v250_v22  ;;  %335 = vst [vmem:[#allocation7 + $0x48] sm:$0xff] %v282_v23 }
 0x106   :  { %v610_v24 = vpop.f32.mrf.mxu0  ;;  %v618_v25 = vpop.f32.mrf.mxu1  ;;  %v347_v30 = vld [vmem:[#allocation7 + $0x10] sm:$0xff] }
 0x107   :  { %332 = vst [vmem:[#allocation7 + $0x30] sm:$0xff] %v610_v24  ;;  %340 = vst [vmem:[#allocation7 + $0x70] sm:$0xff] %v618_v25  ;;  %v355_v34 = vld [vmem:[#allocation7 + $0x50] sm:$0xff] }
 0x108   :  { %v263_v26 = vpop.f32.mrf.mxu0  ;;  %v295_v27 = vpop.f32.mrf.mxu1  ;;  %v345_v36 = vld [vmem:[#allocation7] sm:$0xff] }
 0x109   :  { %330 = vst [vmem:[#allocation7 + $0x20] sm:$0xff] %v263_v26  ;;  %338 = vst [vmem:[#allocation7 + $0x60] sm:$0xff] %v295_v27  ;;  %v353_v40 = vld [vmem:[#allocation7 + $0x40] sm:$0xff] }
 0x10a   :  { %v611_v28 = vpop.f32.mrf.mxu0  ;;  %v619_v29 = vpop.f32.mrf.mxu1  ;;  %v348_v33 = vld [vmem:[#allocation7 + $0x18] sm:$0xff] }
 0x10b   :  { %v356_v35 = vld [vmem:[#allocation7 + $0x58] sm:$0xff]  ;;  %333 = vst [vmem:[#allocation7 + $0x38] sm:$0xff] %v611_v28  ;;  %341 = vst [vmem:[#allocation7 + $0x78] sm:$0xff] %v619_v29  ;;  %v533_v37 = vpack.c.bf16 %v348_v33, %v347_v30 }
 0x10c   :  { %v266_v31 = vpop.f32.mrf.mxu0  ;;  %v298_v32 = vpop.f32.mrf.mxu1  ;;  %v553_v38 = vpack.c.bf16 %v356_v35, %v355_v34  ;;  %v346_v39 = vld [vmem:[#allocation7 + $0x8] sm:$0xff] }
 0x10d   :  { %v354_v41 = vld [vmem:[#allocation7 + $0x48] sm:$0xff]  ;;  %331 = vst [vmem:[#allocation7 + $0x28] sm:$0xff] %v266_v31  ;;  %339 = vst [vmem:[#allocation7 + $0x68] sm:$0xff] %v298_v32  ;;  %v528_v42 = vpack.c.bf16 %v346_v39, %v345_v36 }
 0x10e   :  { %565 = vst [vmem:[#allocation8 + $0x8] sm:$0xff] %v533_v37   ;;  %v548_v43 = vpack.c.bf16 %v354_v41, %v353_v40  ;;  %569 = vst [vmem:[#allocation8 + $0x28] sm:$0xff] %v553_v38  }
 0x10f   :  { %712 = shalt.err (!%p709_p0)
}
 0x110   :  { %s754_s25 = smov 128   ;;  %s755_s26 = smov 8   ;;  %529 = vst [vmem:[#allocation8] sm:$0xff] %v528_v42   ;;  %568 = vst [vmem:[#allocation8 + $0x20] sm:$0xff] %v548_v43   ;;  %v351_v44 = vld [vmem:[#allocation7 + $0x30] sm:$0xff]  ;;  %v349_v48 = vld [vmem:[#allocation7 + $0x20] sm:$0xff] }
 0x111   :  { %452 = dma.vmem_to_hbm [thread:$0]  %s447_s1, 2048, %s800_s2, [#allocation4], %s754_s25, %s754_s25, %s755_s26   ;;  %v359_v46 = vld [vmem:[#allocation7 + $0x70] sm:$0xff]  ;;  %v357_v52 = vld [vmem:[#allocation7 + $0x60] sm:$0xff] }
 0x112   :  { %v352_v45 = vld [vmem:[#allocation7 + $0x38] sm:$0xff]  ;;  %s756_s29 = smov [#allocation8]  }
 0x113   :  { %v360_v47 = vld [vmem:[#allocation7 + $0x78] sm:$0xff]  ;;  %s458_s30 = sshll.u32 %s756_s29, 4  ;;  %v543_v49 = vpack.c.bf16 %v352_v45, %v351_v44  ;;  %s459_s30 = int_to_ptr.vmem [resolvable:$true] %s458_s30 }
 0x114   :  { %v563_v50 = vpack.c.bf16 %v360_v47, %v359_v46  ;;  %v350_v51 = vld [vmem:[#allocation7 + $0x28] sm:$0xff]  ;;  %s721_s2 = scalar_lea.vmem %s459_s30, 1024  ;;  %p726_p2 = scmp.lt.s32.totalorder %s459_s30, %s459_s30 }
 0x115   :  { %v358_v53 = vld [vmem:[#allocation7 + $0x68] sm:$0xff]  ;;  %v538_v54 = vpack.c.bf16 %v350_v51, %v349_v48  ;;  %567 = vst [vmem:[#allocation8 + $0x18] sm:$0xff] %v543_v49   ;;  %p722_p1 = scmp.ne.s32.totalorder %s459_s30, %s721_s2  ;;  %p727_p3 = scmp.lt.s32.totalorder %s721_s2, %s721_s2 }
 0x116   :  { %v558_v55 = vpack.c.bf16 %v358_v53, %v357_v52  ;;  %571 = vst [vmem:[#allocation8 + $0x38] sm:$0xff] %v563_v50  }
 0x117   :  { %566 = vst [vmem:[#allocation8 + $0x10] sm:$0xff] %v538_v54   ;;  %p728_p4 = por %p727_p3, %p726_p2 }
 0x118   :  { %570 = vst [vmem:[#allocation8 + $0x30] sm:$0xff] %v558_v55  }
 0x119   :  { %p729_p5 = pnand %p728_p4, %p722_p1 }
 0x11b   :  { %732 = shalt.err (!%p729_p5)
}
 0x11c   :  { %464 = dma.vmem_to_hbm [thread:$0]  %s459_s30, 1024, %s801_s3, [#allocation9], %s750_s15, %s750_s15, %s751_s16  }
 0x11d   :  { %745 = dma.done.wait [#allocation4], 2048  }
 0x11e   :  { %746 = vsyncadd [#allocation4], 4294965248 }
 0x11f   :  { %747 = dma.done.wait [#allocation9], 1024  }
 0x120   :  { %748 = vsyncadd [#allocation9], 4294966272 }
 0x121   :  { %471 = vsyncpa [#allocation3], 1 }
 0x122   :  { %472 = vsyncpa [#allocation6], 1 }
 0x123   :  { %473 = vsyncpa [#allocation4], 1 }
 0x124   :  { %474 = vsyncpa [#allocation9], 1 }

</bundles_post_ra>
